<compile_context>
chip_gen: v7x
topology: tpu7x:2x2x1
jax: 0.10.0
libtpu: 0.0.40
codegen_flags: <defaults>
</compile_context>

<pallas_src>
import functools
import math

import numpy as np

import jax
import jax.numpy as jnp
from jax.experimental import pallas as pl
from jax.experimental.pallas import tpu as pltpu


def _full_spec(shape):
    # Full-array block (satisfies the (8,128) rule by covering whole dims).
    return pl.BlockSpec(shape, lambda: tuple(0 for _ in shape))


# ----------------------------- fused kernel ---------------------------------

def _dagcn_fused_kernel(x_ref, mprev_ref, mnext_ref,
                        c1w_ref, c1b_ref, c2w_ref, c2b_ref,
                        g1w_ref, g1b_ref, g2w_ref, g2b_ref,
                        f1w_ref, f1b_ref, f2w_ref, f2b_ref, f3w_ref, f3b_ref,
                        o_ref, *, compute_dtype):
    cdt = compute_dtype
    BL = x_ref.shape[0]
    B = o_ref.shape[0]
    L = BL // B
    H = g1w_ref.shape[1]
    C2 = g1w_ref.shape[0]

    def mm(a, b):
        # MXU matmul; operands optionally cast to bf16, always f32 accumulate.
        return jnp.dot(a.astype(cdt), b.astype(cdt),
                       preferred_element_type=jnp.float32)

    x = x_ref[...]                                       # (BL, E) f32
    mprev = mprev_ref[...]                               # (BL, 1) 0/1 f32
    mnext = mnext_ref[...]                               # (BL, 1) 0/1 f32

    # ------------------------- CNN: conv1 -> conv2 --------------------------
    def conv_same_relu(h, w_ref, b_ref):
        # 'same' K=3 Conv1d over L on the row-major (BL, C_in) slab.
        # Neighbour rows come from pltpu.roll along the sublane axis (XLU
        # slot); the 0/1 boundary masks zero rows at sequence edges, which
        # also keeps batches from mixing.  The three taps are fused into a
        # single MXU matmul via a lane-axis concat (<= 128 lanes) against the
        # host-reshaped (3*C_in, C_out) weight.
        n = h.shape[0]
        h_prev = pltpu.roll(h, shift=1, axis=0) * mprev        # row i-1 -> row i
        h_next = pltpu.roll(h, shift=n - 1, axis=0) * mnext    # row i+1 -> row i
        h_cat = jnp.concatenate([h_prev, h, h_next], axis=1)   # (BL, 3*C_in)
        return jnp.maximum(mm(h_cat, w_ref[...]) + b_ref[...], 0.0)

    h1 = conv_same_relu(x, c1w_ref, c1b_ref)             # (BL, 16)
    h2 = conv_same_relu(h1, c2w_ref, c2b_ref)            # (BL, 64)

    # ------------------ global average pool over L (per batch) --------------
    # Pool operator built in-kernel from iotas (no HBM input, no integer div):
    # pool[b, r] = 1/L  iff  b*L <= r < (b+1)*L.
    row_id = jax.lax.broadcasted_iota(jnp.int32, (B, BL), 1)
    bat_lo = jax.lax.broadcasted_iota(jnp.int32, (B, BL), 0) * L
    pool = jnp.where((row_id >= bat_lo) & (row_id < bat_lo + L), 1.0 / L, 0.0)
    feats = mm(pool, h2)                                  # (B, 64)

    # ---------------- MrfGCN: softmax adjacency, 1-hop + 2-hop --------------
    s = jax.lax.dot_general(feats.astype(cdt), feats.astype(cdt),
                            (((1,), (1,)), ((), ())),
                            preferred_element_type=jnp.float32)
    s = s * (1.0 / math.sqrt(C2))
    s = s - jnp.max(s, axis=-1, keepdims=True)
    e = jnp.exp(s)                                        # f32 exp (v5e-safe EUP)
    # approx reciprocal: ~1e-3 rel deviation from exact softmax (inference OK).
    a = e * pl.reciprocal(jnp.sum(e, axis=-1, keepdims=True), approx=True)
    ax = mm(a, feats)                                     # A X
    aax = mm(a, ax)                                       # A (A X): no A @ A
    g1 = jnp.maximum(mm(ax, g1w_ref[...]) + g1b_ref[...], 0.0)    # (B, H)
    g2 = jnp.maximum(mm(aax, g2w_ref[...]) + g2b_ref[...], 0.0)   # (B, H)

    # ------------------------------ classifier ------------------------------
    # concat([g1, g2]) @ W == g1 @ W[:H] + g2 @ W[H:]  -> no lane concat here.
    c1 = mm(g1, f1w_ref[0:H, :]) + mm(g2, f1w_ref[H:2 * H, :]) + f1b_ref[...]
    c1 = jnp.maximum(c1, 0.0)
    c2 = jnp.maximum(mm(c1, f2w_ref[...]) + f2b_ref[...], 0.0)
    # fc3 weight/bias are zero-padded to 128 output lanes -> unmasked store.
    o_ref[...] = (mm(c2, f3w_ref[...]) + f3b_ref[...]).astype(o_ref.dtype)


# ------------------------------ host helpers --------------------------------

def _edge_masks(B, L):
    """(B*L, 1) 0/1 masks: row has a valid previous / next row within its own
    sequence ('same' zero padding + batch isolation), built once at trace time."""
    pos = np.arange(B * L) % L
    mprev = (pos > 0).astype(np.float32).reshape(-1, 1)
    mnext = (pos < L - 1).astype(np.float32).reshape(-1, 1)
    return mprev, mnext


def init_params(key, in_channels=10, num_classes=10):
    def linear_init(k, fan_in, fan_out):
        kw, kb = jax.random.split(k)
        bound = 1.0 / math.sqrt(fan_in)
        return (jax.random.uniform(kw, (fan_in, fan_out), jnp.float32, -bound, bound),
                jax.random.uniform(kb, (fan_out,), jnp.float32, -bound, bound))

    def conv_init(k, c_in, c_out, ksize):
        kw, kb = jax.random.split(k)
        bound = 1.0 / math.sqrt(c_in * ksize)
        # Stored as (K, C_in, C_out): reshapes to the fused (K*C_in, C_out).
        return (jax.random.uniform(kw, (ksize, c_in, c_out), jnp.float32, -bound, bound),
                jax.random.uniform(kb, (c_out,), jnp.float32, -bound, bound))

    ks = jax.random.split(key, 7)
    return {
        "conv1": conv_init(ks[0], in_channels, 16, 3),
        "conv2": conv_init(ks[1], 16, 64, 3),
        "gcn1": linear_init(ks[2], 64, 128),
        "gcn2": linear_init(ks[3], 64, 128),
        "fc1": linear_init(ks[4], 256, 128),
        "fc2": linear_init(ks[5], 128, 64),
        "fc3": linear_init(ks[6], 64, num_classes),
    }


def dagcn_forward(params, x_ble, compute_dtype=jnp.float32):
    B, L, E = x_ble.shape
    c1w, c1b = params["conv1"]
    c2w, c2b = params["conv2"]
    g1w, g1b = params["gcn1"]
    g2w, g2b = params["gcn2"]
    f1w, f1b = params["fc1"]
    f2w, f2b = params["fc2"]
    f3w, f3b = params["fc3"]

    K, c_in, C1 = c1w.shape
    C2 = c2w.shape[2]
    H = g1w.shape[1]
    D1, D2, C = f1w.shape[1], f2w.shape[1], f3w.shape[1]
    assert K == 3, "kernel implements the K=3 'same' Conv1d taps"
    assert c_in == E, "conv1 in_channels must match embedding dim"
    assert c2w.shape[1] == C1 and g2w.shape == g1w.shape and f1w.shape[0] == 2 * H

    # 'B L E -> B E L' followed by channels-first Conv1d over L is evaluated
    # directly on the row-major (B*L, E) slab -> no transposes anywhere.
    x2d = x_ble.reshape(B * L, E)
    mprev, mnext = _edge_masks(B, L)

    # Fuse the K taps into one matmul: (K, C_in, C_out) -> (K*C_in, C_out).
    c1w_cat = c1w.reshape(K * E, C1)
    c2w_cat = c2w.reshape(K * C1, C2)

    # Lane-dense logits: pad the head to a multiple of 128 output lanes.
    Cp = ((C + 127) // 128) * 128
    f3w_p = jnp.zeros((D2, Cp), f3w.dtype).at[:, :C].set(f3w)
    f3b_p = jnp.zeros((Cp,), f3b.dtype).at[:C].set(f3b)

    args = (x2d, jnp.asarray(mprev), jnp.asarray(mnext),
            c1w_cat, c1b.reshape(1, C1), c2w_cat, c2b.reshape(1, C2),
            g1w, g1b.reshape(1, H), g2w, g2b.reshape(1, H),
            f1w, f1b.reshape(1, D1), f2w, f2b.reshape(1, D2),
            f3w_p, f3b_p.reshape(1, Cp))

    BL = B * L
    flops = (2 * BL * (K * E) * C1                       # conv1 (fused taps)
             + 2 * BL * (K * C1) * C2                    # conv2 (fused taps)
             + 2 * B * BL * C2                           # mean pool
             + 2 * B * B * C2 * 3                        # feats@feats.T, AX, A(AX)
             + 2 * B * C2 * H * 2                        # gcn linears
             + 2 * B * (2 * H * D1 + D1 * D2 + D2 * Cp))  # classifier
    bytes_accessed = sum(int(np.prod(a.shape)) * 4 for a in args) + B * Cp * 4

    kernel = functools.partial(_dagcn_fused_kernel, compute_dtype=compute_dtype)

    logits_padded = pl.pallas_call(
        kernel,
        out_shape=jax.ShapeDtypeStruct((B, Cp), jnp.float32),
        in_specs=[_full_spec(a.shape) for a in args],
        out_specs=_full_spec((B, Cp)),
        cost_estimate=pl.CostEstimate(flops=flops, transcendentals=B * B + B,
                                      bytes_accessed=bytes_accessed),
    )(*args)
    return logits_padded[:, :C]


if __name__ == "__main__":
    key = jax.random.PRNGKey(0)
    k_param, k_data = jax.random.split(key)
    B, L, E = 2, 16, 10                                   # E == in_channels == 10
    num_classes = 10
    params = init_params(k_param, in_channels=E, num_classes=num_classes)
    x = jax.random.normal(k_data, (B, L, E), jnp.float32)

    # f32 reference path (default).
    out = jax.block_until_ready(jax.jit(dagcn_forward)(params, x))
    assert out.shape == (B, num_classes), out.shape
    assert bool(jnp.all(jnp.isfinite(out))), "non-finite output"

    # bf16-MXU-operand path (recommended on v6e/v7x): verify against f32.
    out_bf16 = jax.block_until_ready(
        jax.jit(functools.partial(dagcn_forward, compute_dtype=jnp.bfloat16))(params, x))
    assert out_bf16.shape == (B, num_classes), out_bf16.shape
    assert bool(jnp.allclose(out_bf16, out, rtol=1e-1, atol=1e-1)), \
        "bf16 compute path deviates from f32 reference"

    print("KERNEL_OK")
</pallas_src>

<mosaic_0001>
module attributes {stable_mosaic.version = 11 : i64} {
  func.func @_dagcn_fused_kernel(%arg0: memref<32x10xf32, #tpu.memory_space<vmem>>, %arg1: memref<32x1xf32, #tpu.memory_space<vmem>>, %arg2: memref<32x1xf32, #tpu.memory_space<vmem>>, %arg3: memref<30x16xf32, #tpu.memory_space<vmem>>, %arg4: memref<1x16xf32, #tpu.memory_space<vmem>>, %arg5: memref<48x64xf32, #tpu.memory_space<vmem>>, %arg6: memref<1x64xf32, #tpu.memory_space<vmem>>, %arg7: memref<64x128xf32, #tpu.memory_space<vmem>>, %arg8: memref<1x128xf32, #tpu.memory_space<vmem>>, %arg9: memref<64x128xf32, #tpu.memory_space<vmem>>, %arg10: memref<1x128xf32, #tpu.memory_space<vmem>>, %arg11: memref<256x128xf32, #tpu.memory_space<vmem>>, %arg12: memref<1x128xf32, #tpu.memory_space<vmem>>, %arg13: memref<128x64xf32, #tpu.memory_space<vmem>>, %arg14: memref<1x64xf32, #tpu.memory_space<vmem>>, %arg15: memref<64x128xf32, #tpu.memory_space<vmem>>, %arg16: memref<1x128xf32, #tpu.memory_space<vmem>>, %arg17: memref<2x128xf32, #tpu.memory_space<vmem>>) attributes {dimension_semantics = [], scalar_prefetch = 0 : i64, scratch_operands = 0 : i64, tpu.core_type = #tpu.core_type<tc>} {
    %c0 = arith.constant 0 : index
    %c0_0 = arith.constant 0 : index
    %0 = vector.load %arg0[%c0, %c0_0] : memref<32x10xf32, #tpu.memory_space<vmem>>, vector<32x10xf32>
    %c0_1 = arith.constant 0 : index
    %c0_2 = arith.constant 0 : index
    %1 = vector.load %arg1[%c0_1, %c0_2] : memref<32x1xf32, #tpu.memory_space<vmem>>, vector<32x1xf32>
    %c0_3 = arith.constant 0 : index
    %c0_4 = arith.constant 0 : index
    %2 = vector.load %arg2[%c0_3, %c0_4] : memref<32x1xf32, #tpu.memory_space<vmem>>, vector<32x1xf32>
    %c1_i32 = arith.constant 1 : i32
    %3 = tpu.dynamic_rotate %0 by %c1_i32 dim 0 : vector<32x10xf32>, i32 -> vector<32x10xf32>
    %4 = vector.broadcast %1 : vector<32x1xf32> to vector<32x10xf32>
    %5 = arith.mulf %3, %4 : vector<32x10xf32>
    %c31_i32 = arith.constant 31 : i32
    %6 = tpu.dynamic_rotate %0 by %c31_i32 dim 0 : vector<32x10xf32>, i32 -> vector<32x10xf32>
    %7 = vector.broadcast %2 : vector<32x1xf32> to vector<32x10xf32>
    %8 = arith.mulf %6, %7 : vector<32x10xf32>
    %9 = tpu.concatenate %5, %0, %8 in 1 : vector<32x10xf32>, vector<32x10xf32>, vector<32x10xf32> -> vector<32x30xf32>
    %c0_5 = arith.constant 0 : index
    %c0_6 = arith.constant 0 : index
    %10 = vector.load %arg3[%c0_5, %c0_6] : memref<30x16xf32, #tpu.memory_space<vmem>>, vector<30x16xf32>
    %cst = arith.constant dense<0.000000e+00> : vector<32x16xf32>
    %11 = tpu.matmul %9, %10, %cst {dimension_numbers = #tpu.dot_dimension_numbers<[1], [0], [0], [1], [0, 0, 1, 1], [], []>} : vector<32x30xf32>, vector<30x16xf32>, vector<32x16xf32> -> vector<32x16xf32>
    %c0_7 = arith.constant 0 : index
    %c0_8 = arith.constant 0 : index
    %12 = vector.load %arg4[%c0_7, %c0_8] : memref<1x16xf32, #tpu.memory_space<vmem>>, vector<1x16xf32>
    %13 = vector.broadcast %12 : vector<1x16xf32> to vector<32x16xf32>
    %14 = arith.addf %11, %13 : vector<32x16xf32>
    %cst_9 = arith.constant 0.000000e+00 : f32
    %15 = vector.broadcast %cst_9 : f32 to vector<32x16xf32>
    %16 = arith.maximumf %14, %15 : vector<32x16xf32>
    %c1_i32_10 = arith.constant 1 : i32
    %17 = tpu.dynamic_rotate %16 by %c1_i32_10 dim 0 : vector<32x16xf32>, i32 -> vector<32x16xf32>
    %18 = vector.broadcast %1 : vector<32x1xf32> to vector<32x16xf32>
    %19 = arith.mulf %17, %18 : vector<32x16xf32>
    %c31_i32_11 = arith.constant 31 : i32
    %20 = tpu.dynamic_rotate %16 by %c31_i32_11 dim 0 : vector<32x16xf32>, i32 -> vector<32x16xf32>
    %21 = vector.broadcast %2 : vector<32x1xf32> to vector<32x16xf32>
    %22 = arith.mulf %20, %21 : vector<32x16xf32>
    %23 = tpu.concatenate %19, %16, %22 in 1 : vector<32x16xf32>, vector<32x16xf32>, vector<32x16xf32> -> vector<32x48xf32>
    %c0_12 = arith.constant 0 : index
    %c0_13 = arith.constant 0 : index
    %24 = vector.load %arg5[%c0_12, %c0_13] : memref<48x64xf32, #tpu.memory_space<vmem>>, vector<48x64xf32>
    %cst_14 = arith.constant dense<0.000000e+00> : vector<32x64xf32>
    %25 = tpu.matmul %23, %24, %cst_14 {dimension_numbers = #tpu.dot_dimension_numbers<[1], [0], [0], [1], [0, 0, 1, 1], [], []>} : vector<32x48xf32>, vector<48x64xf32>, vector<32x64xf32> -> vector<32x64xf32>
    %c0_15 = arith.constant 0 : index
    %c0_16 = arith.constant 0 : index
    %26 = vector.load %arg6[%c0_15, %c0_16] : memref<1x64xf32, #tpu.memory_space<vmem>>, vector<1x64xf32>
    %27 = vector.broadcast %26 : vector<1x64xf32> to vector<32x64xf32>
    %28 = arith.addf %25, %27 : vector<32x64xf32>
    %cst_17 = arith.constant 0.000000e+00 : f32
    %29 = vector.broadcast %cst_17 : f32 to vector<32x64xf32>
    %30 = arith.maximumf %28, %29 : vector<32x64xf32>
    %31 = tpu.iota {dimensions = array<i32: 1>} : vector<2x32xi32>
    %32 = tpu.iota {dimensions = array<i32: 0>} : vector<2x32xi32>
    %c16_i32 = arith.constant 16 : i32
    %33 = vector.broadcast %c16_i32 : i32 to vector<2x32xi32>
    %34 = arith.muli %32, %33 : vector<2x32xi32>
    %35 = arith.cmpi sge, %31, %34 : vector<2x32xi32>
    %c16_i32_18 = arith.constant 16 : i32
    %36 = vector.broadcast %c16_i32_18 : i32 to vector<2x32xi32>
    %37 = arith.addi %34, %36 : vector<2x32xi32>
    %38 = arith.cmpi slt, %31, %37 : vector<2x32xi32>
    %39 = arith.andi %35, %38 : vector<2x32xi1>
    %cst_19 = arith.constant 6.250000e-02 : f32
    %cst_20 = arith.constant 0.000000e+00 : f32
    %40 = vector.broadcast %cst_19 : f32 to vector<2x32xf32>
    %41 = vector.broadcast %cst_20 : f32 to vector<2x32xf32>
    %42 = arith.select %39, %40, %41 : vector<2x32xi1>, vector<2x32xf32>
    %cst_21 = arith.constant dense<0.000000e+00> : vector<2x64xf32>
    %43 = tpu.matmul %42, %30, %cst_21 {dimension_numbers = #tpu.dot_dimension_numbers<[1], [0], [0], [1], [0, 0, 1, 1], [], []>} : vector<2x32xf32>, vector<32x64xf32>, vector<2x64xf32> -> vector<2x64xf32>
    %cst_22 = arith.constant dense<0.000000e+00> : vector<2x2xf32>
    %44 = tpu.matmul %43, %43, %cst_22 {dimension_numbers = #tpu.dot_dimension_numbers<[1], [1], [0], [0], [0, 0, 1, 0], [], []>} : vector<2x64xf32>, vector<2x64xf32>, vector<2x2xf32> -> vector<2x2xf32>
    %cst_23 = arith.constant 1.250000e-01 : f32
    %45 = vector.broadcast %cst_23 : f32 to vector<2x2xf32>
    %46 = arith.mulf %44, %45 : vector<2x2xf32>
    %cst_24 = arith.constant dense<0xFF800000> : vector<2xf32>
    %47 = vector.multi_reduction <maximumf>, %46, %cst_24 [1] : vector<2x2xf32> to vector<2xf32>
    %48 = vector.shape_cast %47 : vector<2xf32> to vector<2x1xf32>
    %49 = vector.broadcast %48 : vector<2x1xf32> to vector<2x2xf32>
    %50 = arith.subf %46, %49 : vector<2x2xf32>
    %51 = math.exp %50 : vector<2x2xf32>
    %cst_25 = arith.constant dense<0.000000e+00> : vector<2xf32>
    %52 = vector.multi_reduction <add>, %51, %cst_25 [1] : vector<2x2xf32> to vector<2xf32>
    %53 = vector.shape_cast %52 : vector<2xf32> to vector<2x1xf32>
    %54 = tpu.reciprocal %53 {approx = true} : vector<2x1xf32> -> vector<2x1xf32>
    %55 = vector.broadcast %54 : vector<2x1xf32> to vector<2x2xf32>
    %56 = arith.mulf %51, %55 : vector<2x2xf32>
    %cst_26 = arith.constant dense<0.000000e+00> : vector<2x64xf32>
    %57 = tpu.matmul %56, %43, %cst_26 {dimension_numbers = #tpu.dot_dimension_numbers<[1], [0], [0], [1], [0, 0, 1, 1], [], []>} : vector<2x2xf32>, vector<2x64xf32>, vector<2x64xf32> -> vector<2x64xf32>
    %cst_27 = arith.constant dense<0.000000e+00> : vector<2x64xf32>
    %58 = tpu.matmul %56, %57, %cst_27 {dimension_numbers = #tpu.dot_dimension_numbers<[1], [0], [0], [1], [0, 0, 1, 1], [], []>} : vector<2x2xf32>, vector<2x64xf32>, vector<2x64xf32> -> vector<2x64xf32>
    %c0_28 = arith.constant 0 : index
    %c0_29 = arith.constant 0 : index
    %59 = vector.load %arg7[%c0_28, %c0_29] : memref<64x128xf32, #tpu.memory_space<vmem>>, vector<64x128xf32>
    %cst_30 = arith.constant dense<0.000000e+00> : vector<2x128xf32>
    %60 = tpu.matmul %57, %59, %cst_30 {dimension_numbers = #tpu.dot_dimension_numbers<[1], [0], [0], [1], [0, 0, 1, 1], [], []>} : vector<2x64xf32>, vector<64x128xf32>, vector<2x128xf32> -> vector<2x128xf32>
    %c0_31 = arith.constant 0 : index
    %c0_32 = arith.constant 0 : index
    %61 = vector.load %arg8[%c0_31, %c0_32] : memref<1x128xf32, #tpu.memory_space<vmem>>, vector<1x128xf32>
    %62 = vector.broadcast %61 : vector<1x128xf32> to vector<2x128xf32>
    %63 = arith.addf %60, %62 : vector<2x128xf32>
    %cst_33 = arith.constant 0.000000e+00 : f32
    %64 = vector.broadcast %cst_33 : f32 to vector<2x128xf32>
    %65 = arith.maximumf %63, %64 : vector<2x128xf32>
    %c0_34 = arith.constant 0 : index
    %c0_35 = arith.constant 0 : index
    %66 = vector.load %arg9[%c0_34, %c0_35] : memref<64x128xf32, #tpu.memory_space<vmem>>, vector<64x128xf32>
    %cst_36 = arith.constant dense<0.000000e+00> : vector<2x128xf32>
    %67 = tpu.matmul %58, %66, %cst_36 {dimension_numbers = #tpu.dot_dimension_numbers<[1], [0], [0], [1], [0, 0, 1, 1], [], []>} : vector<2x64xf32>, vector<64x128xf32>, vector<2x128xf32> -> vector<2x128xf32>
    %c0_37 = arith.constant 0 : index
    %c0_38 = arith.constant 0 : index
    %68 = vector.load %arg10[%c0_37, %c0_38] : memref<1x128xf32, #tpu.memory_space<vmem>>, vector<1x128xf32>
    %69 = vector.broadcast %68 : vector<1x128xf32> to vector<2x128xf32>
    %70 = arith.addf %67, %69 : vector<2x128xf32>
    %cst_39 = arith.constant 0.000000e+00 : f32
    %71 = vector.broadcast %cst_39 : f32 to vector<2x128xf32>
    %72 = arith.maximumf %70, %71 : vector<2x128xf32>
    %c0_40 = arith.constant 0 : index
    %c0_41 = arith.constant 0 : index
    %73 = vector.load %arg11[%c0_40, %c0_41] : memref<256x128xf32, #tpu.memory_space<vmem>>, vector<128x128xf32>
    %cst_42 = arith.constant dense<0.000000e+00> : vector<2x128xf32>
    %74 = tpu.matmul %65, %73, %cst_42 {dimension_numbers = #tpu.dot_dimension_numbers<[1], [0], [0], [1], [0, 0, 1, 1], [], []>} : vector<2x128xf32>, vector<128x128xf32>, vector<2x128xf32> -> vector<2x128xf32>
    %c128 = arith.constant 128 : index
    %c0_43 = arith.constant 0 : index
    %75 = vector.load %arg11[%c128, %c0_43] : memref<256x128xf32, #tpu.memory_space<vmem>>, vector<128x128xf32>
    %cst_44 = arith.constant dense<0.000000e+00> : vector<2x128xf32>
    %76 = tpu.matmul %72, %75, %cst_44 {dimension_numbers = #tpu.dot_dimension_numbers<[1], [0], [0], [1], [0, 0, 1, 1], [], []>} : vector<2x128xf32>, vector<128x128xf32>, vector<2x128xf32> -> vector<2x128xf32>
    %77 = arith.addf %74, %76 : vector<2x128xf32>
    %c0_45 = arith.constant 0 : index
    %c0_46 = arith.constant 0 : index
    %78 = vector.load %arg12[%c0_45, %c0_46] : memref<1x128xf32, #tpu.memory_space<vmem>>, vector<1x128xf32>
    %79 = vector.broadcast %78 : vector<1x128xf32> to vector<2x128xf32>
    %80 = arith.addf %77, %79 : vector<2x128xf32>
    %cst_47 = arith.constant 0.000000e+00 : f32
    %81 = vector.broadcast %cst_47 : f32 to vector<2x128xf32>
    %82 = arith.maximumf %80, %81 : vector<2x128xf32>
    %c0_48 = arith.constant 0 : index
    %c0_49 = arith.constant 0 : index
    %83 = vector.load %arg13[%c0_48, %c0_49] : memref<128x64xf32, #tpu.memory_space<vmem>>, vector<128x64xf32>
    %cst_50 = arith.constant dense<0.000000e+00> : vector<2x64xf32>
    %84 = tpu.matmul %82, %83, %cst_50 {dimension_numbers = #tpu.dot_dimension_numbers<[1], [0], [0], [1], [0, 0, 1, 1], [], []>} : vector<2x128xf32>, vector<128x64xf32>, vector<2x64xf32> -> vector<2x64xf32>
    %c0_51 = arith.constant 0 : index
    %c0_52 = arith.constant 0 : index
    %85 = vector.load %arg14[%c0_51, %c0_52] : memref<1x64xf32, #tpu.memory_space<vmem>>, vector<1x64xf32>
    %86 = vector.broadcast %85 : vector<1x64xf32> to vector<2x64xf32>
    %87 = arith.addf %84, %86 : vector<2x64xf32>
    %cst_53 = arith.constant 0.000000e+00 : f32
    %88 = vector.broadcast %cst_53 : f32 to vector<2x64xf32>
    %89 = arith.maximumf %87, %88 : vector<2x64xf32>
    %c0_54 = arith.constant 0 : index
    %c0_55 = arith.constant 0 : index
    %90 = vector.load %arg15[%c0_54, %c0_55] : memref<64x128xf32, #tpu.memory_space<vmem>>, vector<64x128xf32>
    %cst_56 = arith.constant dense<0.000000e+00> : vector<2x128xf32>
    %91 = tpu.matmul %89, %90, %cst_56 {dimension_numbers = #tpu.dot_dimension_numbers<[1], [0], [0], [1], [0, 0, 1, 1], [], []>} : vector<2x64xf32>, vector<64x128xf32>, vector<2x128xf32> -> vector<2x128xf32>
    %c0_57 = arith.constant 0 : index
    %c0_58 = arith.constant 0 : index
    %92 = vector.load %arg16[%c0_57, %c0_58] : memref<1x128xf32, #tpu.memory_space<vmem>>, vector<1x128xf32>
    %93 = vector.broadcast %92 : vector<1x128xf32> to vector<2x128xf32>
    %94 = arith.addf %91, %93 : vector<2x128xf32>
    %c0_59 = arith.constant 0 : index
    %c0_60 = arith.constant 0 : index
    %95 = vector.load %arg17[%c0_59, %c0_60] : memref<2x128xf32, #tpu.memory_space<vmem>>, vector<2x128xf32>
    tpu.vector_store %arg17[%c0_59, %c0_60], %94 {strides = array<i32>} : memref<2x128xf32, #tpu.memory_space<vmem>>, vector<2x128xf32>,
    return
  }
}

</mosaic_0001>

<bundles_post_ra>
// kernel: dagcn_forward.1
= control target key start
LH: loop header
LB: loop body
LE: loop exit
PB: predicated region body
PF: predicated region fallthrough
CT: control target
= control target key end

     0   :  { %s2459_s0 = inlined_call_operand.vmem [shape: f32[32,10], index: 0, kind: input, shape index: {}]   ;;  %s2460_s1 = inlined_call_operand.vmem [shape: f32[32,1], index: 1, kind: input, shape index: {}]   ;;  %s2461_s2 = inlined_call_operand.vmem [shape: f32[32,1], index: 2, kind: input, shape index: {}]   ;;  %s2462_s3 = inlined_call_operand.vmem [shape: f32[30,16], index: 3, kind: input, shape index: {}]   ;;  %s2463_s4 = inlined_call_operand.vmem [shape: f32[1,16], index: 4, kind: input, shape index: {}]   ;;  %s2464_s5 = inlined_call_operand.vmem [shape: f32[48,64], index: 5, kind: input, shape index: {}]   ;;  %s2465_s6 = inlined_call_operand.vmem [shape: f32[1,64], index: 6, kind: input, shape index: {}]   ;;  %s2466_s7 = inlined_call_operand.vmem [shape: f32[64,128], index: 7, kind: input, shape index: {}]   ;;  %s2467_s8 = inlined_call_operand.vmem [shape: f32[1,128], index: 8, kind: input, shape index: {}]   ;;  %s2468_s9 = inlined_call_operand.vmem [shape: f32[64,128], index: 9, kind: input, shape index: {}]   ;;  %s2469_s10 = inlined_call_operand.vmem [shape: f32[1,128], index: 10, kind: input, shape index: {}]   ;;  %s2470_s11 = inlined_call_operand.vmem [shape: f32[256,128], index: 11, kind: input, shape index: {}]   ;;  %s2471_s12 = inlined_call_operand.vmem [shape: f32[1,128], index: 12, kind: input, shape index: {}]   ;;  %s2472_s13 = inlined_call_operand.vmem [shape: f32[128,64], index: 13, kind: input, shape index: {}]   ;;  %s2473_s14 = inlined_call_operand.vmem [shape: f32[1,64], index: 14, kind: input, shape index: {}]   ;;  %s2474_s15 = inlined_call_operand.vmem [shape: f32[64,128], index: 15, kind: input, shape index: {}]   ;;  %s2475_s16 = inlined_call_operand.vmem [shape: f32[1,128], index: 16, kind: input, shape index: {}]   ;;  %s2476_s17 = inlined_call_operand.hbm [shape: f32[2,128], index: 17, kind: output, shape index: {}]  }
   0x1   :  { %2479 = sst [smem:[#allocation5_spill]] %s2459_s0 }
   0x2   :  { %2480 = sst [smem:[#allocation6_spill]] %s2460_s1 }
   0x3   :  { %v67_v0 = vld [vmem:[%s2461_s2 + $0x10] sm:$0xff]  ;;  %v65_v1 = vld [vmem:[%s2461_s2] sm:$0xff]  ;;  %v73_v2 = vlaneseq  ;;  %v1879_v3 = vmov 0   ;;  %v68_v4 = vld [vmem:[%s2461_s2 + $0x18] sm:$0xff]  ;;  %s2481_s18 = sld [smem:[#allocation5_spill]] }
   0x4   :  { %1850 = vset.pattern.permute.xlu1 %v1879_v3  ;;  %1849 = vset.pattern.permute.xlu0 %v1879_v3  ;;  %v66_v7 = vld [vmem:[%s2461_s2 + $0x8] sm:$0xff] }
   0x5   :  { %125 = vperm.xlu1 %1850, %v67_v0   ;;  %115 = vperm.xlu0 %1849, %v65_v1   ;;  %v1992_v6 = vshrl.u32 %v73_v2, 7 }
   0x9   :  { %v58_v5 = vld [vmem:[%s2481_s18 + $0x8] sm:$0xff]  ;;  %v57_v9 = vld [vmem:[%s2481_s18] sm:$0xff]  ;;  %v60_v10 = vld [vmem:[%s2481_s18 + $0x18] sm:$0xff] }
   0xa   :  { %v105_v8 = vrot.slane %v58_v5, 1  ;;  %v70_v11 = vrot.slane %v58_v5, 7  ;;  %v104_v12 = vrot.slane %v57_v9, 1  ;;  %v107_v13 = vrot.slane %v60_v10, 1  ;;  %v59_v14 = vld [vmem:[%s2481_s18 + $0x10] sm:$0xff] }
   0xb   :  { %22 = vsyncpa [#allocation3], 0  ;;  %v69_v15 = vrot.slane %v57_v9, 7  ;;  %v72_v16 = vrot.slane %v60_v10, 7  ;;  %v106_v17 = vrot.slane %v59_v14, 1  ;;  %vm108_vm0 = vcmp.lt.s32.totalorder %v1992_v6, 7  ;;  %130 = vperm.xlu1 %1850, %v68_v4   ;;  %120 = vperm.xlu0 %1849, %v66_v7  }
   0xc   :  { %v111_v18 = vsel %vm108_vm0, %v104_v12, %v105_v8  ;;  %v112_v19 = vsel %vm108_vm0, %v107_v13, %v104_v12  ;;  %s2482_s27 = sld [smem:[#allocation6_spill]]  ;;  %vm75_vm1 = vcmp.lt.s32.totalorder %v1992_v6, 1  ;;  %v71_v24 = vrot.slane %v59_v14, 7  ;;  %s1880_s1 = smov 10   ;;  %v179_v31 = vld [vmem:[%s2462_s3] sm:$0xff]  ;;  %v180_v32 = vld [vmem:[%s2462_s3 + $0x8] sm:$0xff] }
   0xd   :  { %v109_v22 = vsel %vm108_vm0, %v106_v17, %v107_v13  ;;  %v110_v23 = vsel %vm108_vm0, %v105_v8, %v106_v17  ;;  %v78_v25 = vsel %vm75_vm1, %v69_v15, %v70_v11  ;;  %v79_v26 = vsel %vm75_vm1, %v72_v16, %v69_v15  ;;  %v181_v34 = vld [vmem:[%s2462_s3 + $0x10] sm:$0xff]  ;;  %v182_v35 = vld [vmem:[%s2462_s3 + $0x18] sm:$0x3f]  ;;  %v362_v7 = vld [vmem:[%s2464_s5] sm:$0xff]  ;;  %s1883_s2 = smov 16   ;;  %s1888_s24 = smov [#allocation2]  }
   0xe   :  { %v76_v29 = vsel %vm75_vm1, %v71_v24, %v72_v16  ;;  %v77_v30 = vsel %vm75_vm1, %v70_v11, %v71_v24  ;;  %v1703_v33 = vpack.c.bf16 %v180_v32, %v179_v31  ;;  %vm203_vm2 = vcmask 1045504   ;;  %v363_v8 = vld [vmem:[%s2464_s5 + $0x8] sm:$0xff]  ;;  %v365_v11 = vld [vmem:[%s2464_s5 + $0x18] sm:$0xff]  ;;  %v366_v13 = vld [vmem:[%s2464_s5 + $0x20] sm:$0xff]  ;;  %s1342_s25 = sshll.u32 %s1888_s24, 4  ;;  %s1343_s25 = int_to_ptr.vmem [resolvable:$true] %s1342_s25 }
   0xf   :  { %v1707_v36 = vpack.c.bf16 %v182_v35, %v181_v34  ;;  %vm1881_vm3 = vmmov 1   ;;  %vm169_vm5 = vcmask 80896   ;;  %vm174_vm6 = vcmask 162816   ;;  %v1350_v15 = vld [vmem:[%s2463_s4] ss:$0 sm:$0xff]  ;;  %s1884_s4 = smov 32   ;;  %p1860_p1 = scmp.lt.s32.totalorder %s1343_s25, %s1343_s25 }
  0x10   :  { %1704 = vmatprep.subr.bf16.mxu0 %v1703_v33  ;;  %vm1708_vm4 = vmpackc.low %vm203_vm2, %vm1881_vm3  ;;  %vm190_vm7 = vcmask 244736   ;;  %vm352_vm8 = vcmask 130048   ;;  %vm357_vm9 = vcmask 261120   ;;  %vm375_vm10 = vcmask 392192  }
  0x11   :  { %1706 = vmatpush3.bf16.msra.mxu0 %v1703_v33  ;;  %vm1886_vm11 = vmmov 0   ;;  %vm558_vm15 = vcmask 523264   ;;  %vm645_vm2 = vcmask 15360  }
  0x12   :  { %v62_v20 = vld [vmem:[%s2482_s27 + $0x8] sm:$0xff]  ;;  %v61_v21 = vld [vmem:[%s2482_s27] sm:$0xff]  ;;  %v64_v27 = vld [vmem:[%s2482_s27 + $0x18] sm:$0xff]  ;;  %1709 = vmatprep.subr.msk.bf16.mxu0 %vm1708_vm4, %v1707_v36 }
  0x13   :  { %87 = vperm.xlu1 %1850, %v62_v20   ;;  %82 = vperm.xlu0 %1849, %v61_v21   ;;  %v63_v28 = vld [vmem:[%s2482_s27 + $0x10] sm:$0xff]  ;;  %s1882_s27 = smov 20  }
  0x15   :  { %1712 = vmatpush3.bf16.msk.msra.mxu0 %vm1708_vm4, %v1707_v36 }
  0x17   :  { %97 = vperm.xlu1 %1850, %v64_v27   ;;  %92 = vperm.xlu0 %1849, %v63_v28  }
  0x1b   :  { %143 = vrot.lane.b32.xlu1 %v58_v5, %s1880_s1  ;;  %141 = vrot.lane.b32.xlu0 %v57_v9, %s1880_s1  ;;  %v1713_v9 = vpack.c.bf16 %v363_v8, %v362_v7 }
  0x1d   :  { %1714 = vmatprep.subr.bf16.mxu1 %v1713_v9 }
  0x1e   :  { %1716 = vmatpush3.bf16.msra.mxu1 %v1713_v9  ;;  %v1356_v9 = vld [vmem:[%s2465_s6] ss:$0 sm:$0xff] }
  0x1f   :  { %147 = vrot.lane.b32.xlu1 %v60_v10, %s1880_s1  ;;  %145 = vrot.lane.b32.xlu0 %v59_v14, %s1880_s1  ;;  %v364_v10 = vld [vmem:[%s2464_s5 + $0x10] sm:$0xff]  ;;  %v367_v14 = vld [vmem:[%s2464_s5 + $0x28] sm:$0xff] }
  0x20   :  { %v1717_v12 = vpack.c.bf16 %v365_v11, %v364_v10  ;;  %v1721_v16 = vpack.c.bf16 %v367_v14, %v366_v13  ;;  %v479_v10 = vmul.u32 16, %v1992_v6 }
  0x22   :  { %1718 = vmatprep.subr.bf16.mxu1 %v1717_v12 }
  0x23   :  { %1720 = vmatpush3.bf16.msra.mxu1 %v1717_v12 }
  0x24   :  { %1722 = vmatprep.subr.bf16.mxu1 %v1721_v16 }
  0x27   :  { %1724 = vmatpush3.bf16.msra.mxu1 %v1721_v16  ;;  %v481_v16 = vadd.s32 16, %v479_v10 }
  0x84   :  { %v2048_v37 = vpop.permute.xlu1 %125  ;;  %v2050_v38 = vpop.permute.xlu0 %115 }
  0x85   :  { %v133_v39 = vmul.f32 %v2050_v38, %v111_v18  ;;  %v135_v40 = vmul.f32 %v2048_v37, %v109_v22 }
  0x87   :  { %157 = vrot.lane.b32.xlu0 %v133_v39, %s1882_s27 }
  0x8a   :  { %v2054_v41 = vpop.permute.xlu0 %120  ;;  %v2057_v43 = vpop.permute.xlu1 %130 }
  0x8b   :  { %v134_v42 = vmul.f32 %v2054_v41, %v110_v23  ;;  %161 = vrot.lane.b32.xlu0 %v135_v40, %s1882_s27  ;;  %v136_v44 = vmul.f32 %v2057_v43, %v112_v19 }
  0x8d   :  { %159 = vrot.lane.b32.xlu1 %v134_v42, %s1882_s27 }
  0x91   :  { %163 = vrot.lane.b32.xlu1 %v136_v44, %s1882_s27 }
  0x92   :  { %v2060_v45 = vpop.permute.xlu0 %82  ;;  %v2062_v46 = vpop.permute.xlu1 %87 }
  0x93   :  { %v100_v52 = vmul.f32 %v2060_v45, %v79_v26  ;;  %v101_v57 = vmul.f32 %v2062_v46, %v78_v25 }
  0x96   :  { %v2064_v47 = vpop.permute.xlu0 %92  ;;  %v2066_v48 = vpop.permute.xlu1 %97 }
  0x97   :  { %v102_v58 = vmul.f32 %v2064_v47, %v77_v30  ;;  %v103_v1 = vmul.f32 %v2066_v48, %v76_v29 }
  0x9a   :  { %v142_v49 = vpop.permute.xlu0 %141  ;;  %v144_v50 = vpop.permute.xlu1 %143 }
  0x9b   :  { %v170_v53 = vsel %vm169_vm5, %v100_v52, %v142_v49  ;;  %v171_v59 = vsel %vm169_vm5, %v101_v57, %v144_v50 }
  0x9e   :  { %v146_v51 = vpop.permute.xlu0 %145  ;;  %v148_v54 = vpop.permute.xlu1 %147 }
  0x9f   :  { %v172_v60 = vsel %vm169_vm5, %v102_v58, %v146_v51  ;;  %v173_v3 = vsel %vm169_vm5, %v103_v1, %v148_v54 }
  0xf9   :  { %v158_v55 = vpop.permute.xlu0 %157 }
  0xfa   :  { %v175_v56 = vsel %vm174_vm6, %v170_v53, %v158_v55 }
  0xfb   :  { %1491 = vmatprep.mubr.msk.f32.mxu0 %vm190_vm7, %v175_v56 }
  0xfd   :  { %v162_v62 = vpop.permute.xlu0 %161 }
  0xfe   :  { %v177_v0 = vsel %vm174_vm6, %v172_v60, %v162_v62 }
  0xff   :  { %v160_v61 = vpop.permute.xlu1 %159 }
 0x100   :  { %v176_v63 = vsel %vm174_vm6, %v171_v59, %v160_v61 }
 0x101   :  { %1492 = vmatmul.mubr.msk.f32.vlgmr.msra.gmra.mrb[0].mxu0 %vm190_vm7, %v176_v63 }
 0x102   :  { %1494 = vmatprep.mubr.msk.f32.mxu0 %vm190_vm7, %v177_v0 }
 0x103   :  { %v164_v4 = vpop.permute.xlu1 %163 }
 0x104   :  { %v178_v5 = vsel %vm174_vm6, %v173_v3, %v164_v4 }
 0x105   :  { %1495 = vmatmul.mubr.msk.f32.gmra.mrb[2].mxu0 %vm190_vm7, %v178_v5 }
 0x1d4   :  { %v1493_v17 = vpop.f32.mrb[0].mxu0 }
 0x1d5   :  { %v279_v18 = vadd.f32 %v1493_v17, %v1350_v15  ;;  %v273_v19 = vpop.f32.mrb[1].mxu0 }
 0x1d6   :  { %v274_v20 = vadd.f32 %v1350_v15, %v273_v19 }
 0x1d7   :  { %v293_v21 = vmax.f32 %v279_v18, 0.0 }
 0x1d8   :  { %v292_v22 = vmax.f32 %v274_v20, 0.0  ;;  %v1496_v23 = vpop.f32.mrb[2].mxu0 }
 0x1d9   :  { %v297_v24 = vrot.slane %v293_v21, 7  ;;  %v309_v25 = vrot.slane %v293_v21, 1  ;;  %v289_v26 = vadd.f32 %v1496_v23, %v1350_v15  ;;  %326 = vrot.lane.b32.xlu1 %v293_v21, %s1883_s2  ;;  %v283_v27 = vpop.f32.mrb[3].mxu0 }
 0x1da   :  { %v296_v28 = vrot.slane %v292_v22, 7  ;;  %v308_v29 = vrot.slane %v292_v22, 1  ;;  %v284_v30 = vadd.f32 %v1350_v15, %v283_v27  ;;  %324 = vrot.lane.b32.xlu0 %v292_v22, %s1883_s2  ;;  %v478_v15 = vand.u32 127, %v73_v2 }
 0x1db   :  { %v295_v31 = vmax.f32 %v289_v26, 0.0 }
 0x1dc   :  { %v294_v32 = vmax.f32 %v284_v30, 0.0  ;;  %v314_v33 = vsel %vm108_vm0, %v308_v29, %v309_v25  ;;  %v302_v34 = vsel %vm75_vm1, %v296_v28, %v297_v24  ;;  %vm480_vm12 = vcmp.ge.s32.totalorder %v478_v15, %v479_v10  ;;  %v991_v10 = vld [vmem:[%s2470_s11 + $0x98] sm:$0xff] }
 0x1dd   :  { %v299_v35 = vrot.slane %v295_v31, 7  ;;  %v311_v36 = vrot.slane %v295_v31, 1  ;;  %330 = vrot.lane.b32.xlu1 %v295_v31, %s1883_s2  ;;  %v316_v49 = vmul.f32 %v314_v33, %v2050_v38  ;;  %v305_v60 = vmul.f32 %v302_v34, %v2062_v46 }
 0x1de   :  { %v298_v39 = vrot.slane %v294_v32, 7  ;;  %v310_v40 = vrot.slane %v294_v32, 1  ;;  %328 = vrot.lane.b32.xlu0 %v294_v32, %s1883_s2  ;;  %vm482_vm13 = vcmp.lt.s32.totalorder %v478_v15, %v481_v16  ;;  %v994_v15 = vld [vmem:[%s2470_s11 + $0xb0] sm:$0xff]  ;;  %v995_v16 = vld [vmem:[%s2470_s11 + $0xb8] sm:$0xff] }
 0x1df   :  { %v315_v42 = vsel %vm108_vm0, %v311_v36, %v308_v29  ;;  %v303_v44 = vsel %vm75_vm1, %v299_v35, %v296_v28  ;;  %vm483_vm14 = vmand %vm480_vm12, %vm482_vm13 }
 0x1e0   :  { %v313_v50 = vsel %vm108_vm0, %v309_v25, %v310_v40  ;;  %v312_v51 = vsel %vm108_vm0, %v310_v40, %v311_v36  ;;  %v300_v53 = vsel %vm75_vm1, %v298_v39, %v299_v35  ;;  %v301_v54 = vsel %vm75_vm1, %v297_v24, %v298_v39  ;;  %v795_v39 = vld [vmem:[%s2466_s7] sm:$0xff]  ;;  %v796_v40 = vld [vmem:[%s2466_s7 + $0x8] sm:$0xff] }
 0x1e1   :  { %v317_v52 = vmul.f32 %v313_v50, %v2054_v41  ;;  %v318_v55 = vmul.f32 %v312_v51, %v2048_v37  ;;  %v319_v38 = vmul.f32 %v315_v42, %v2057_v43  ;;  %v304_v59 = vmul.f32 %v303_v44, %v2060_v45  ;;  %v797_v42 = vld [vmem:[%s2466_s7 + $0x10] sm:$0xff]  ;;  %v799_v51 = vld [vmem:[%s2466_s7 + $0x20] sm:$0xff] }
 0x1e2   :  { %340 = vrot.lane.b32.xlu0 %v316_v49, %s1884_s4  ;;  %v306_v0 = vmul.f32 %v301_v54, %v2064_v47  ;;  %v307_v45 = vmul.f32 %v300_v53, %v2066_v48  ;;  %v1885_v47 = vmov 0.0|0.0   ;;  %v1887_v48 = vmov 0.0   ;;  %v798_v49 = vld [vmem:[%s2466_s7 + $0x18] sm:$0xff]  ;;  %v801_v54 = vld [vmem:[%s2466_s7 + $0x30] sm:$0xff] }
 0x1e3   :  { %342 = vrot.lane.b32.xlu1 %v317_v52, %s1884_s4  ;;  %1725 = vmatprep.subr.bf16.mxu0 %v1885_v47  ;;  %v484_v2 = vsel %vm483_vm14, 0.0625, %v1887_v48  ;;  %vm649_vm0 = vcmask 1041408   ;;  %vm633_vm1 = vcmask 9216   ;;  %v1732_v44 = vpack.c.bf16 %v796_v40, %v795_v39  ;;  %v800_v52 = vld [vmem:[%s2466_s7 + $0x28] sm:$0xff]  ;;  %v978_v40 = vld [vmem:[%s2470_s11 + $0x30] sm:$0xff] }
 0x1e4   :  { %1731 = vmatprep.subr.bf16.mxu1 %v1885_v47  ;;  %1523 = vmatprep.mubr.msk.f32.mxu0 %vm1886_vm11, %v1887_v48  ;;  %v1735_v50 = vpack.c.bf16 %v798_v49, %v797_v42  ;;  %v1738_v53 = vpack.c.bf16 %v800_v52, %v799_v51  ;;  %v979_v42 = vld [vmem:[%s2470_s11 + $0x38] sm:$0xff]  ;;  %v980_v49 = vld [vmem:[%s2470_s11 + $0x40] sm:$0xff]  ;;  %v982_v52 = vld [vmem:[%s2470_s11 + $0x50] sm:$0xff] }
 0x1e6   :  { %344 = vrot.lane.b32.xlu0 %v318_v55, %s1884_s4  ;;  %v802_v55 = vld [vmem:[%s2466_s7 + $0x38] sm:$0xff] }
 0x1e7   :  { %346 = vrot.lane.b32.xlu1 %v319_v38, %s1884_s4  ;;  %v1741_v38 = vpack.c.bf16 %v802_v55, %v801_v54  ;;  %v984_v55 = vld [vmem:[%s2470_s11 + $0x60] sm:$0xff] }
 0x24b   :  { %v327_v56 = vpop.permute.xlu1 %326 }
 0x24c   :  { %v325_v57 = vpop.permute.xlu0 %324  ;;  %v354_v37 = vsel %vm352_vm8, %v305_v60, %v327_v56 }
 0x24d   :  { %v353_v61 = vsel %vm352_vm8, %v304_v59, %v325_v57  ;;  %v884_v59 = vld [vmem:[%s2468_s9 + $0x8] sm:$0xff] }
 0x24f   :  { %v331_v41 = vpop.permute.xlu1 %330 }
 0x250   :  { %v329_v58 = vpop.permute.xlu0 %328  ;;  %v356_v4 = vsel %vm352_vm8, %v307_v45, %v331_v41  ;;  %v883_v41 = vld [vmem:[%s2468_s9] sm:$0xff] }
 0x251   :  { %v355_v46 = vsel %vm352_vm8, %v306_v0, %v329_v58  ;;  %v1744_v60 = vpack.c.bf16 %v884_v59, %v883_v41  ;;  %v887_v0 = vld [vmem:[%s2468_s9 + $0x20] sm:$0xff] }
 0x252   :  { %v1368_v41 = vld [vmem:[%s2467_s8] ss:$0 sm:$0xff] }
 0x254   :  { %v341_v62 = vpop.permute.xlu0 %340 }
 0x255   :  { %v343_v63 = vpop.permute.xlu1 %342  ;;  %v358_v43 = vsel %vm357_vm9, %v353_v61, %v341_v62  ;;  %v885_v62 = vld [vmem:[%s2468_s9 + $0x10] sm:$0xff] }
 0x256   :  { %v359_v1 = vsel %vm357_vm9, %v354_v37, %v343_v63  ;;  %1509 = vmatprep.mubr.msk.f32.mxu1 %vm375_vm10, %v358_v43  ;;  %v886_v37 = vld [vmem:[%s2468_s9 + $0x18] sm:$0xff] }
 0x257   :  { %1510 = vmatmul.mubr.msk.f32.vlgmr.msra.gmra.mrb[0].mxu1 %vm375_vm10, %v359_v1  ;;  %v1747_v43 = vpack.c.bf16 %v886_v37, %v885_v62  ;;  %v888_v1 = vld [vmem:[%s2468_s9 + $0x28] sm:$0xff]  ;;  %v1002_v62 = vld [vmem:[%s2470_s11 + $0xf0] sm:$0xff]  ;;  %v1003_v37 = vld [vmem:[%s2470_s11 + $0xf8] sm:$0xff] }
 0x258   :  { %v345_v3 = vpop.permute.xlu0 %344  ;;  %1733 = vmatpush3.bf16.msra.mxu1 %v1732_v44  ;;  %v1750_v45 = vpack.c.bf16 %v888_v1, %v887_v0  ;;  %v1789_v44 = vpack.c.bf16 %v979_v42, %v978_v40  ;;  %v1153_v0 = vld [vmem:[%s2472_s13] sm:$0xff]  ;;  %v1154_v1 = vld [vmem:[%s2472_s13 + $0x8] sm:$0xff] }
 0x259   :  { %v360_v5 = vsel %vm357_vm9, %v355_v46, %v345_v3  ;;  %v347_v7 = vpop.permute.xlu1 %346  ;;  %1734 = vmatprep.subr.bf16.mxu1 %v1885_v47  ;;  %v889_v46 = vld [vmem:[%s2468_s9 + $0x30] sm:$0xff]  ;;  %v890_v3 = vld [vmem:[%s2468_s9 + $0x38] sm:$0xff] }
 0x25a   :  { %v361_v8 = vsel %vm357_vm9, %v356_v4, %v347_v7  ;;  %1512 = vmatprep.mubr.msk.f32.mxu1 %vm375_vm10, %v360_v5  ;;  %v1753_v4 = vpack.c.bf16 %v890_v3, %v889_v46  ;;  %v988_v5 = vld [vmem:[%s2470_s11 + $0x80] sm:$0xff]  ;;  %v989_v7 = vld [vmem:[%s2470_s11 + $0x88] sm:$0xff] }
 0x25b   :  { %1513 = vmatmul.mubr.msk.f32.gmra.mrb[2].mxu1 %vm375_vm10, %v361_v8  ;;  %v990_v8 = vld [vmem:[%s2470_s11 + $0x90] sm:$0xff] }
 0x25c   :  { %1557 = vmatprep.mubr.msk.f32.mxu1 %vm1886_vm11, %v1887_v48  ;;  %1736 = vmatpush3.bf16.msra.mxu1 %v1735_v50  ;;  %v981_v50 = vld [vmem:[%s2470_s11 + $0x48] sm:$0xff] }
 0x25d   :  { %1737 = vmatprep.subr.bf16.mxu1 %v1885_v47  ;;  %v1792_v51 = vpack.c.bf16 %v981_v50, %v980_v49  ;;  %v1253_v50 = vld [vmem:[%s2474_s15 + $0x30] sm:$0xff] }
 0x260   :  { %1739 = vmatpush3.bf16.msra.mxu1 %v1738_v53  ;;  %v983_v53 = vld [vmem:[%s2470_s11 + $0x58] sm:$0xff] }
 0x261   :  { %1740 = vmatprep.subr.bf16.mxu1 %v1885_v47  ;;  %v1795_v54 = vpack.c.bf16 %v983_v53, %v982_v52 }
 0x264   :  { %1742 = vmatpush3.bf16.msra.mxu1 %v1741_v38  ;;  %v985_v38 = vld [vmem:[%s2470_s11 + $0x68] sm:$0xff] }
 0x265   :  { %1755 = vmatprep.subr.bf16.mxu1 %v1885_v47 }
 0x32a   :  { %v1511_v11 = vpop.f32.mrb[0].mxu1 }
 0x32b   :  { %v460_v12 = vadd.f32 %v1511_v11, %v1356_v9  ;;  %v454_v13 = vpop.f32.mrb[1].mxu1  ;;  %v1759_v11 = vpack.c.bf16 %v991_v10, %v990_v8  ;;  %v1156_v8 = vld [vmem:[%s2472_s13 + $0x18] sm:$0xff]  ;;  %v1157_v10 = vld [vmem:[%s2472_s13 + $0x20] sm:$0xff] }
 0x32c   :  { %v455_v14 = vadd.f32 %v1356_v9, %v454_v13  ;;  %v993_v13 = vld [vmem:[%s2470_s11 + $0xa8] sm:$0xff] }
 0x32d   :  { %v474_v17 = vmax.f32 %v460_v12, 0.0  ;;  %v992_v12 = vld [vmem:[%s2470_s11 + $0xa0] sm:$0xff] }
 0x32e   :  { %v473_v18 = vmax.f32 %v455_v14, 0.0  ;;  %v1514_v19 = vpop.f32.mrb[2].mxu1  ;;  %v1762_v14 = vpack.c.bf16 %v993_v13, %v992_v12  ;;  %v1159_v13 = vld [vmem:[%s2472_s13 + $0x30] sm:$0xff] }
 0x32f   :  { %v470_v20 = vadd.f32 %v1514_v19, %v1356_v9  ;;  %v464_v21 = vpop.f32.mrb[3].mxu1  ;;  %v997_v19 = vld [vmem:[%s2470_s11 + $0xc8] sm:$0xff] }
 0x330   :  { %v1726_v22 = vpack.c.bf16 %v474_v17, %v473_v18  ;;  %v465_v23 = vadd.f32 %v1356_v9, %v464_v21  ;;  %v1756_v9 = vpack.c.bf16 %v989_v7, %v988_v5  ;;  %v1765_v17 = vpack.c.bf16 %v995_v16, %v994_v15  ;;  %v996_v18 = vld [vmem:[%s2470_s11 + $0xc0] sm:$0xff]  ;;  %v998_v21 = vld [vmem:[%s2470_s11 + $0xd0] sm:$0xff]  ;;  %v1162_v16 = vld [vmem:[%s2472_s13 + $0x48] sm:$0xff] }
 0x331   :  { %v476_v24 = vmax.f32 %v470_v20, 0.0  ;;  %v1768_v20 = vpack.c.bf16 %v997_v19, %v996_v18  ;;  %v1155_v7 = vld [vmem:[%s2472_s13 + $0x10] sm:$0xff]  ;;  %v1161_v15 = vld [vmem:[%s2472_s13 + $0x40] sm:$0xff]  ;;  %v1164_v19 = vld [vmem:[%s2472_s13 + $0x58] sm:$0xff] }
 0x332   :  { %v475_v25 = vmax.f32 %v465_v23, 0.0  ;;  %1727 = vmatpush3.bf16.msra.mxu0 %v1726_v22  ;;  %v999_v22 = vld [vmem:[%s2470_s11 + $0xd8] sm:$0xff]  ;;  %v1163_v18 = vld [vmem:[%s2472_s13 + $0x50] sm:$0xff] }
 0x333   :  { %1728 = vmatprep.subr.bf16.mxu0 %v1885_v47  ;;  %v1771_v23 = vpack.c.bf16 %v999_v22, %v998_v21 }
 0x334   :  { %v1729_v6 = vpack.c.bf16 %v476_v24, %v475_v25  ;;  %v1000_v24 = vld [vmem:[%s2470_s11 + $0xe0] sm:$0xff]  ;;  %v1001_v25 = vld [vmem:[%s2470_s11 + $0xe8] sm:$0xff] }
 0x336   :  { %1730 = vmatpush3.bf16.msra.mxu0 %v1729_v6  ;;  %v1774_v6 = vpack.c.bf16 %v1001_v25, %v1000_v24  ;;  %v1166_v24 = vld [vmem:[%s2472_s13 + $0x68] sm:$0xff] }
 0x337   :  { %1526 = vmatprep.subr.mxu0 %v1887_v48 }
 0x339   :  { %1524 = vmatmul.mubr.msk.f32.vlgmr.msra.gmra.mrb[4].mxu0 %vm357_vm9, %v484_v2  ;;  %v972_v2 = vld [vmem:[%s2470_s11] sm:$0xff] }
 0x33a   :  { %1528 = vmatprep.mubr.msk.f32.mxu0 %vm1886_vm11, %v1887_v48 }
 0x40c   :  { %v554_v26 = vpop.f32.mrb[4].mxu0 }
 0x40d   :  { %v1525_v27 = vpop.f32.mrb[5].mxu0  ;;  %1527 = vmatpush3.xpose.msk.msra.mxu0 %vm558_vm15, %v554_v26 }
 0x40e   :  { %1531 = vmatprep.subr.mxu0 %v1887_v48 }
 0x410   :  { %1529 = vmatmul.mubr.msk.f32.vlgmr.msra.gmra.mrb[6].mxu0 %vm558_vm15, %v554_v26 }
 0x411   :  { %1532 = vmatpush3.msk.msra.mxu0 %vm649_vm0, %v554_v26  ;;  %1533 = vmatprep.mubr.msk.f32.mxu0 %vm1886_vm11, %v1887_v48  ;;  %v973_v26 = vld [vmem:[%s2470_s11 + $0x8] sm:$0xff] }
 0x412   :  { %1536 = vmatprep.subr.mxu0 %v1887_v48  ;;  %v1780_v27 = vpack.c.bf16 %v973_v26, %v972_v2  ;;  %v1168_v2 = vld [vmem:[%s2472_s13 + $0x78] sm:$0xff] }
 0x4e3   :  { %v628_v28 = vpop.f32.mrb[6].mxu0 }
 0x4e4   :  { %v632_v29 = vmul.f32 0.125, %v628_v28  ;;  %v1530_v30 = vpop.f32.mrb[7].mxu0 }
 0x4e5   :  { %v975_v30 = vld [vmem:[%s2470_s11 + $0x18] sm:$0xff] }
 0x4e6   :  { %v634_v31 = vsel %vm633_vm1, %v632_v29, -inf }
 0x4e7   :  { %635 = vmax.xlane.f32.xlu0 %v634_v31 }
 0x574   :  { %v636_v32 = vpop.xlane.xlu0 %635 }
 0x575   :  { %v637_v33 = vsub.f32 %v632_v29, %v636_v32  ;;  %v974_v29 = vld [vmem:[%s2470_s11 + $0x10] sm:$0xff] }
 0x577   :  { %v638_v34 = vmul.f32 1.442695, %v637_v33 }
 0x579   :  { %1851 = vpow2.f32 %v638_v34  ;;  %v1783_v34 = vpack.c.bf16 %v975_v30, %v974_v29  ;;  %v1249_v29 = vld [vmem:[%s2474_s15 + $0x10] sm:$0xff] }
 0x583   :  { %v1852_v35 = vpop.eup %1851 }
 0x584   :  { %v640_v36 = vsel %vm633_vm1, %v1852_v35, 0.0 }
 0x585   :  { %641 = vadd.xlane.f32.xlu1 %v640_v36  ;;  %v977_v36 = vld [vmem:[%s2470_s11 + $0x28] sm:$0xff] }
 0x612   :  { %v642_v56 = vpop.xlane.xlu1 %641 }
 0x613   :  { %1853 = vrcp.f32 %v642_v56  ;;  %v1798_v56 = vpack.c.bf16 %v985_v38, %v984_v55 }
 0x61d   :  { %v1854_v57 = vpop.eup %1853 }
 0x61e   :  { %v644_v58 = vmul.f32 %v1854_v57, %v1852_v35  ;;  %v976_v35 = vld [vmem:[%s2470_s11 + $0x20] sm:$0xff]  ;;  %v986_v57 = vld [vmem:[%s2470_s11 + $0x70] sm:$0xff] }
 0x61f   :  { %v1786_v39 = vpack.c.bf16 %v977_v36, %v976_v35 }
 0x620   :  { %1534 = vmatmul.mubr.msk.f32.vlgmr.msra.gmra.mrb[8].mxu0 %vm645_vm2, %v644_v58 }
 0x621   :  { %1538 = vmatprep.mubr.msk.f32.mxu0 %vm1886_vm11, %v1887_v48 }
 0x6f3   :  { %v718_v61 = vpop.f32.mrb[8].mxu0 }
 0x6f4   :  { %v1535_v63 = vpop.f32.mrb[9].mxu0  ;;  %1537 = vmatpush3.msk.msra.mxu0 %vm649_vm0, %v718_v61  ;;  %1558 = vmatmul.mubr.msk.f32.vlgmr.msra.gmra.mrb[4].mxu1 %vm558_vm15, %v718_v61 }
 0x6f5   :  { %1539 = vmatmul.mubr.msk.f32.vlgmr.msra.gmra.mrb[10].mxu0 %vm645_vm2, %v644_v58  ;;  %1743 = vmatprep.subr.bf16.mxu0 %v1885_v47  ;;  %v987_v58 = vld [vmem:[%s2470_s11 + $0x78] sm:$0xff]  ;;  %v1777_v63 = vpack.c.bf16 %v1003_v37, %v1002_v62 }
 0x6f6   :  { %1745 = vmatpush3.bf16.msra.mxu0 %v1744_v60  ;;  %1576 = vmatprep.mubr.msk.f32.mxu0 %vm1886_vm11, %v1887_v48  ;;  %v1801_v59 = vpack.c.bf16 %v987_v58, %v986_v57 }
 0x6f7   :  { %1746 = vmatprep.subr.bf16.mxu0 %v1885_v47  ;;  %1611 = vmatprep.mubr.msk.f32.mxu1 %vm1886_vm11, %v1887_v48 }
 0x6f8   :  { %1757 = vmatpush3.bf16.msra.mxu1 %v1756_v9  ;;  %v1807_v9 = vpack.c.bf16 %v1156_v8, %v1155_v7 }
 0x6f9   :  { %1758 = vmatprep.subr.bf16.mxu1 %v1885_v47 }
 0x6fa   :  { %1748 = vmatpush3.bf16.msra.mxu0 %v1747_v43  ;;  %v1370_v43 = vld [vmem:[%s2469_s10] ss:$0 sm:$0xff] }
 0x6fb   :  { %1749 = vmatprep.subr.bf16.mxu0 %v1885_v47 }
 0x6fc   :  { %1760 = vmatpush3.bf16.msra.mxu1 %v1759_v11  ;;  %v1158_v11 = vld [vmem:[%s2472_s13 + $0x28] sm:$0xff] }
 0x6fd   :  { %1761 = vmatprep.subr.bf16.mxu1 %v1885_v47  ;;  %v1810_v12 = vpack.c.bf16 %v1158_v11, %v1157_v10 }
 0x6fe   :  { %1751 = vmatpush3.bf16.msra.mxu0 %v1750_v45 }
 0x6ff   :  { %1752 = vmatprep.subr.bf16.mxu0 %v1885_v47 }
 0x700   :  { %1763 = vmatpush3.bf16.msra.mxu1 %v1762_v14 }
 0x701   :  { %1764 = vmatprep.subr.bf16.mxu1 %v1885_v47 }
 0x702   :  { %1754 = vmatpush3.bf16.msra.mxu0 %v1753_v4  ;;  %v1804_v4 = vpack.c.bf16 %v1154_v1, %v1153_v0 }
 0x703   :  { %1779 = vmatprep.subr.bf16.mxu0 %v1885_v47 }
 0x704   :  { %1766 = vmatpush3.bf16.msra.mxu1 %v1765_v17  ;;  %v1816_v17 = vpack.c.bf16 %v1162_v16, %v1161_v15 }
 0x705   :  { %1767 = vmatprep.subr.bf16.mxu1 %v1885_v47 }
 0x708   :  { %1769 = vmatpush3.bf16.msra.mxu1 %v1768_v20  ;;  %v1819_v20 = vpack.c.bf16 %v1164_v19, %v1163_v18 }
 0x709   :  { %1770 = vmatprep.subr.bf16.mxu1 %v1885_v47 }
 0x70c   :  { %1772 = vmatpush3.bf16.msra.mxu1 %v1771_v23  ;;  %v1165_v23 = vld [vmem:[%s2472_s13 + $0x60] sm:$0xff] }
 0x70d   :  { %1773 = vmatprep.subr.bf16.mxu1 %v1885_v47  ;;  %v1822_v25 = vpack.c.bf16 %v1166_v24, %v1165_v23 }
 0x710   :  { %1775 = vmatpush3.bf16.msra.mxu1 %v1774_v6  ;;  %v1167_v6 = vld [vmem:[%s2472_s13 + $0x70] sm:$0xff] }
 0x711   :  { %1776 = vmatprep.subr.bf16.mxu1 %v1885_v47  ;;  %v1825_v26 = vpack.c.bf16 %v1168_v2, %v1167_v6 }
 0x714   :  { %1778 = vmatpush3.bf16.msra.mxu1 %v1777_v63 }
 0x715   :  { %1803 = vmatprep.subr.bf16.mxu1 %v1885_v47 }
 0x7c7   :  { %v878_v28 = vpop.f32.mrb[4].mxu1 }
 0x7c8   :  { %v791_v31 = vpop.f32.mrb[10].mxu0  ;;  %v1559_v32 = vpop.f32.mrb[5].mxu1  ;;  %v879_v60 = vadd.f32 %v1368_v41, %v878_v28  ;;  %v1248_v28 = vld [vmem:[%s2474_s15 + $0x8] sm:$0xff] }
 0x7c9   :  { %v1540_v33 = vpop.f32.mrb[11].mxu0  ;;  %1577 = vmatmul.mubr.msk.f32.vlgmr.msra.gmra.mrb[12].mxu0 %vm558_vm15, %v791_v31  ;;  %v1250_v31 = vld [vmem:[%s2474_s15 + $0x18] sm:$0xff] }
 0x7ca   :  { %1781 = vmatpush3.bf16.msra.mxu0 %v1780_v27  ;;  %1646 = vmatprep.mubr.msk.f32.mxu0 %vm1886_vm11, %v1887_v48  ;;  %v882_v61 = vmax.f32 %v879_v60, 0.0  ;;  %v1247_v27 = vld [vmem:[%s2474_s15] sm:$0xff]  ;;  %v1831_v32 = vpack.c.bf16 %v1250_v31, %v1249_v29 }
 0x7cb   :  { %1782 = vmatprep.subr.bf16.mxu0 %v1885_v47  ;;  %v1828_v30 = vpack.c.bf16 %v1248_v28, %v1247_v27  ;;  %v1251_v33 = vld [vmem:[%s2474_s15 + $0x20] sm:$0xff] }
 0x7ce   :  { %1784 = vmatpush3.bf16.msra.mxu0 %v1783_v34  ;;  %v1252_v34 = vld [vmem:[%s2474_s15 + $0x28] sm:$0xff] }
 0x7cf   :  { %1785 = vmatprep.subr.bf16.mxu0 %v1885_v47  ;;  %v1834_v35 = vpack.c.bf16 %v1252_v34, %v1251_v33 }
 0x7d2   :  { %1787 = vmatpush3.bf16.msra.mxu0 %v1786_v39  ;;  %v1372_v39 = vld [vmem:[%s2471_s12] ss:$0 sm:$0xff] }
 0x7d3   :  { %1788 = vmatprep.subr.bf16.mxu0 %v1885_v47 }
 0x7d6   :  { %1790 = vmatpush3.bf16.msra.mxu0 %v1789_v44 }
 0x7d7   :  { %1791 = vmatprep.subr.bf16.mxu0 %v1885_v47 }
 0x7da   :  { %1793 = vmatpush3.bf16.msra.mxu0 %v1792_v51  ;;  %v1254_v51 = vld [vmem:[%s2474_s15 + $0x38] sm:$0xff]  ;;  %s1855_s15 = scalar_lea.vmem %s1343_s25, 32 }
 0x7db   :  { %1794 = vmatprep.subr.bf16.mxu0 %v1885_v47  ;;  %v1837_v52 = vpack.c.bf16 %v1254_v51, %v1253_v50  ;;  %p1856_p0 = scmp.ne.s32.totalorder %s1343_s25, %s1855_s15  ;;  %p1861_p2 = scmp.lt.s32.totalorder %s1855_s15, %s1855_s15 }
 0x7dd   :  { %p1862_p3 = por %p1861_p2, %p1860_p1 }
 0x7de   :  { %1796 = vmatpush3.bf16.msra.mxu0 %v1795_v54 }
 0x7df   :  { %1797 = vmatprep.subr.bf16.mxu0 %v1885_v47  ;;  %p1863_p4 = pnand %p1862_p3, %p1856_p0 }
 0x7e2   :  { %1799 = vmatpush3.bf16.msra.mxu0 %v1798_v56  ;;  %v1374_v56 = vld [vmem:[%s2475_s16] ss:$0 sm:$0xff] }
 0x7e3   :  { %1800 = vmatprep.subr.bf16.mxu0 %v1885_v47 }
 0x7e6   :  { %1802 = vmatpush3.bf16.msra.mxu0 %v1801_v59 }
 0x7e7   :  { %1827 = vmatprep.subr.bf16.mxu0 %v1885_v47 }
 0x7e9   :  { %1647 = vmatmul.mubr.f32.vlgmr.msra.gmra.mrb[14].mxu0 %v882_v61 }
 0x7ea   :  { %1700 = vmatprep.mubr.msk.f32.mxu0 %vm1886_vm11, %v1887_v48  ;;  %1829 = vmatpush3.bf16.msra.mxu0 %v1828_v30 }
 0x7eb   :  { %1830 = vmatprep.subr.bf16.mxu0 %v1885_v47 }
 0x7ee   :  { %1832 = vmatpush3.bf16.msra.mxu0 %v1831_v32 }
 0x7ef   :  { %1833 = vmatprep.subr.bf16.mxu0 %v1885_v47 }
 0x7f2   :  { %1835 = vmatpush3.bf16.msra.mxu0 %v1834_v35 }
 0x7f3   :  { %1836 = vmatprep.subr.bf16.mxu0 %v1885_v47 }
 0x7f6   :  { %1838 = vmatpush3.bf16.msra.mxu0 %v1837_v52 }
 0x89c   :  { %v967_v45 = vpop.f32.mrb[12].mxu0 }
 0x89d   :  { %v968_v46 = vadd.f32 %v1370_v43, %v967_v45  ;;  %v1578_v3 = vpop.f32.mrb[13].mxu0 }
 0x89f   :  { %v971_v5 = vmax.f32 %v968_v46, 0.0 }
 0x8a1   :  { %1612 = vmatmul.mubr.f32.vlgmr.msra.gmra.mrb[6].mxu1 %v971_v5 }
 0x8a2   :  { %1805 = vmatpush3.bf16.msra.mxu1 %v1804_v4  ;;  %1681 = vmatprep.mubr.msk.f32.mxu1 %vm1886_vm11, %v1887_v48  ;;  %v1160_v48 = vld [vmem:[%s2472_s13 + $0x38] sm:$0xff] }
 0x8a3   :  { %1806 = vmatprep.subr.bf16.mxu1 %v1885_v47  ;;  %v1813_v14 = vpack.c.bf16 %v1160_v48, %v1159_v13 }
 0x8a6   :  { %1808 = vmatpush3.bf16.msra.mxu1 %v1807_v9 }
 0x8a7   :  { %1809 = vmatprep.subr.bf16.mxu1 %v1885_v47 }
 0x8aa   :  { %1811 = vmatpush3.bf16.msra.mxu1 %v1810_v12 }
 0x8ab   :  { %1812 = vmatprep.subr.bf16.mxu1 %v1885_v47 }
 0x8ae   :  { %1814 = vmatpush3.bf16.msra.mxu1 %v1813_v14 }
 0x8af   :  { %1815 = vmatprep.subr.bf16.mxu1 %v1885_v47 }
 0x8b2   :  { %1817 = vmatpush3.bf16.msra.mxu1 %v1816_v17 }
 0x8b3   :  { %1818 = vmatprep.subr.bf16.mxu1 %v1885_v47 }
 0x8b6   :  { %1820 = vmatpush3.bf16.msra.mxu1 %v1819_v20 }
 0x8b7   :  { %1821 = vmatprep.subr.bf16.mxu1 %v1885_v47 }
 0x8ba   :  { %1823 = vmatpush3.bf16.msra.mxu1 %v1822_v25 }
 0x8bb   :  { %1824 = vmatprep.subr.bf16.mxu1 %v1885_v47  ;;  %v1373_v47 = vld [vmem:[%s2473_s14] ss:$0 sm:$0xff] }
 0x8bc   :  { %v1140_v21 = vpop.f32.mrb[14].mxu0 }
 0x8bd   :  { %v1648_v22 = vpop.f32.mrb[15].mxu0 }
 0x8be   :  { %1826 = vmatpush3.bf16.msra.mxu1 %v1825_v26 }
 0x974   :  { %v1070_v36 = vpop.f32.mrb[6].mxu1 }
 0x975   :  { %v1141_v40 = vadd.f32 %v1140_v21, %v1070_v36  ;;  %v1613_v42 = vpop.f32.mrb[7].mxu1 }
 0x977   :  { %v1151_v44 = vadd.f32 %v1372_v39, %v1141_v40 }
 0x979   :  { %v1152_v49 = vmax.f32 %v1151_v44, 0.0 }
 0x97b   :  { %1682 = vmatmul.mubr.f32.vlgmr.msra.gmra.mrb[8].mxu1 %v1152_v49 }
 0xa4e   :  { %v1242_v53 = vpop.f32.mrb[8].mxu1 }
 0xa4f   :  { %v1243_v54 = vadd.f32 %v1373_v47, %v1242_v53  ;;  %v1683_v55 = vpop.f32.mrb[9].mxu1 }
 0xa51   :  { %v1246_v38 = vmax.f32 %v1243_v54, 0.0 }
 0xa53   :  { %1701 = vmatmul.mubr.msk.f32.vlgmr.msra.gmra.mrb[16].mxu0 %vm558_vm15, %v1246_v38 }
 0xb26   :  { %v1331_v57 = vpop.f32.mrb[16].mxu0 }
 0xb27   :  { %v1332_v58 = vadd.f32 %v1374_v56, %v1331_v57  ;;  %v1702_v41 = vpop.f32.mrb[17].mxu0 }
 0xb29   :  { %1335 = vst [vmem:[#allocation2] sm:$0x3] %v1332_v58 }
 0xb2a   :  { %1866 = shalt.err (!%p1863_p4)
}
 0xb2b   :  { %s1867_s2 = scalar_lea.hbm %s2476_s17, 32 }
 0xb2c   :  { %p1868_p5 = scmp.ne.s32.totalorder %s2476_s17, %s1867_s2  ;;  %p1871_p6 = scmp.lt.u32.totalorder %s1867_s2, %s2476_s17 }
 0xb2e   :  { %p1873_p7 = pnand %p1871_p6, %p1868_p5 }
 0xb30   :  { %1876 = shalt.err (!%p1873_p7)
}
 0xb31   :  { %1345 = dma.vmem_to_hbm [thread:$0]  %s1343_s25, 32, %s2476_s17, [#allocation3]  }
 0xb32   :  { %1877 = dma.done.wait [#allocation3], 32  }
 0xb33   :  { %1878 = vsyncadd [#allocation3], 4294967264 }
 0xb34   :  { %1349 = vsyncpa [#allocation3], 1 }

</bundles_post_ra>
